<compile_context>
chip_gen: v7x
topology: tpu7x:2x2x1
jax: 0.10.0
libtpu: 0.0.40
codegen_flags: <defaults>
</compile_context>

<pallas_src>
import jax
import jax.numpy as jnp
from jax.experimental import pallas as pl
from jax.experimental.pallas import tpu as pltpu


def _fully_conv_kernel(w_ref, b_ref, x_ref, o_ref):
    """1x1 conv (C -> 1) on one pixel tile.

    w_ref : SMEM (C,)  float32 weights
    b_ref : SMEM (1,)  float32 bias
    x_ref : VMEM (Nb, C, R, L)  [tiled path]   or  (Nb, C, T)  [flat path]
    o_ref : VMEM (Nb, R, L)                    or  (Nb, 1, T)
    """
    C = x_ref.shape[1]
    # Small static C -> unrolled VPU multiply-adds.  For larger C, use a few
    # independent partial accumulators so the VALU dependency chain does not
    # serialize (keep the VPU path; an MXU matmul would waste the 128/256-wide
    # systolic array on a single output row).
    npar = 1 if C < 8 else (2 if C < 16 else 4)
    npar = min(npar, C)
    accs = [x_ref[:, p].astype(jnp.float32) * w_ref[p] for p in range(npar)]
    for c in range(npar, C):
        p = c % npar
        accs[p] = accs[p] + x_ref[:, c].astype(jnp.float32) * w_ref[c]
    acc = accs[0]
    for a in accs[1:]:
        acc = acc + a
    res = (acc + b_ref[0]).astype(o_ref.dtype)
    if res.ndim == len(o_ref.shape):
        o_ref[...] = res          # (Nb, R, L) tiled path
    else:
        o_ref[:, 0] = res         # (Nb, 1, T) flat (ragged-M) path


def fully_conv_layer_pallas(x_nchw, weight, bias, *,
                            target_block_bytes=2 << 20,
                            vmem_budget_bytes=12 << 20):
    """Forward of PyTorch `fully_conv_layer`: nn.Conv2d(c, 1, 1).

    x_nchw : (N, C, H, W)
    weight : (1, C, 1, 1)
    bias   : (1,)
    returns: (N, 1, H, W)
    """
    N, C, H, W = map(int, x_nchw.shape)
    M = H * W
    in_item = x_nchw.dtype.itemsize
    out_item = in_item
    # sublane packing of the input dtype: 8 (f32) / 16 (bf16) / 32 (int8/fp8)
    sub = max(8, 32 // in_item)

    w_vec = weight.reshape(C).astype(jnp.float32)
    b_vec = bias.reshape(1).astype(jnp.float32)

    # ---- fold small images along the batch axis so each grid step moves a DMA
    #      payload large enough to amortize the ~0.35 us/step overhead ---------
    per_batch_in = C * M * in_item
    Nb = 1
    if N > 1 and per_batch_in < target_block_bytes:
        want = max(1, target_block_bytes // max(per_batch_in, 1))
        Nb = max(d for d in range(1, N + 1) if N % d == 0 and d <= want)

    smem_specs = [
        pl.BlockSpec(memory_space=pltpu.MemorySpace.SMEM),   # weights (C,)
        pl.BlockSpec(memory_space=pltpu.MemorySpace.SMEM),   # bias (1,)
    ]

    if M % 128 == 0:
        # ---- dense 2-D (rows x lanes) tiling, no padding ---------------------
        q = M // 128
        d = max(dd for dd in range(1, min(q, 16) + 1) if q % dd == 0)
        L = 128 * d                       # multiple of 128 dividing M, <= 2048
        rows = M // L

        def footprint(nb, r, l):          # double-buffered input + output tiles
            return 2 * nb * r * l * (C * in_item + out_item)

        if Nb > 1:
            R = rows
        else:
            r_want = (target_block_bytes // max(C * L * in_item, 1)) // sub * sub
            R = rows if r_want >= rows else max(min(sub, rows), r_want)
        while footprint(Nb, R, L) > vmem_budget_bytes and R > sub:
            R = max(sub, (R // 2) // sub * sub)
        if footprint(Nb, R, L) > vmem_budget_bytes and L > 128:
            L, rows = 128, M // 128       # shrink lanes once R hit its floor
            R = min(sub, rows)
        fp = footprint(Nb, R, L)

        x_arr = x_nchw.reshape(N, C, rows, L)           # free reshape
        grid = (N // Nb, pl.cdiv(rows, R))
        in_specs = smem_specs + [
            pl.BlockSpec((Nb, C, R, L), lambda n, t: (n, 0, t, 0))]
        out_specs = pl.BlockSpec((Nb, R, L), lambda n, t: (n, t, 0))
        out_shape = jax.ShapeDtypeStruct((N, rows, L), x_nchw.dtype)
    else:
        # ---- ragged H*W: flat pixel axis, no wrapper pad / output slice ------
        # The last grid step is a partial edge block; Pallas masks the OOB
        # reads/writes, which is safe for this elementwise op.
        t_floor = max(128, (M // 128) * 128)
        if Nb > 1:
            T = t_floor
        else:
            t_want = (target_block_bytes // max(C * in_item, 1)) // 128 * 128
            T = min(max(128, t_want), t_floor)

        def footprint_f(nb, t):
            return 2 * nb * t * (C * in_item + out_item)

        while footprint_f(Nb, T) > vmem_budget_bytes and T > 128:
            T = max(128, (T // 2) // 128 * 128)
        fp = footprint_f(Nb, T)

        x_arr = x_nchw.reshape(N, C, M)                 # free reshape
        grid = (N // Nb, pl.cdiv(M, T))
        in_specs = smem_specs + [
            pl.BlockSpec((Nb, C, T), lambda n, t: (n, 0, t))]
        out_specs = pl.BlockSpec((Nb, 1, T), lambda n, t: (n, 0, t))
        out_shape = jax.ShapeDtypeStruct((N, 1, M), x_nchw.dtype)

    # Raise the scoped-VMEM limit only when even the minimal tile (rare, very
    # large C) exceeds the conservative budget that fits every generation's
    # default scoped limit (v5e 16 MiB / v6e 32 MiB / v7x 32 MiB of 64 MiB).
    # TODO(synk): for extreme C where a single channel slab exceeds physical
    # VMEM, split the channel reduction over an extra "arbitrary" grid axis.
    cp_kwargs = dict(dimension_semantics=("parallel", "parallel"))
    if fp > vmem_budget_bytes:
        cp_kwargs["vmem_limit_bytes"] = int(fp) + (4 << 20)

    out = pl.pallas_call(
        _fully_conv_kernel,
        out_shape=out_shape,
        grid=grid,
        in_specs=in_specs,
        out_specs=out_specs,
        compiler_params=pltpu.CompilerParams(**cp_kwargs),
    )(w_vec, b_vec, x_arr)

    # Free reshape back to NCHW with a single output channel.
    return out.reshape(N, 1, H, W)


if __name__ == "__main__":
    key = jax.random.PRNGKey(0)
    k_x, k_w, k_b, k_x2 = jax.random.split(key, 4)

    N, C = 2, 4
    weight = jax.random.normal(k_w, (1, C, 1, 1), dtype=jnp.float32) * 0.1
    bias = jax.random.normal(k_b, (1,), dtype=jnp.float32) * 0.1

    # Case 1: H*W multiple of 128 -> dense (rows, lanes) tiled path.
    H, W = 16, 16
    x = jax.random.normal(k_x, (N, C, H, W), dtype=jnp.float32)
    out = jax.block_until_ready(fully_conv_layer_pallas(x, weight, bias))
    ref = jnp.einsum("nchw,c->nhw", x, weight.reshape(C))[:, None] + bias[0]
    assert out.shape == (N, 1, H, W)
    assert jnp.allclose(out, ref, atol=1e-5, rtol=1e-5)

    # Case 2: ragged H*W -> flat, pad-free path with a masked partial edge block.
    H2, W2 = 6, 40                       # M = 240, not a multiple of 128
    x2 = jax.random.normal(k_x2, (N, C, H2, W2), dtype=jnp.float32)
    out2 = jax.block_until_ready(fully_conv_layer_pallas(x2, weight, bias))
    ref2 = jnp.einsum("nchw,c->nhw", x2, weight.reshape(C))[:, None] + bias[0]
    assert out2.shape == (N, 1, H2, W2)
    assert jnp.allclose(out2, ref2, atol=1e-5, rtol=1e-5)

    print("KERNEL_OK")
</pallas_src>

<mosaic_0001>
module attributes {stable_mosaic.version = 11 : i64} {
  func.func @_fully_conv_kernel(%arg0: i32, %arg1: i32, %arg2: memref<4xf32, #tpu.memory_space<smem>>, %arg3: memref<1xf32, #tpu.memory_space<smem>>, %arg4: memref<2x4x1x256xf32, #tpu.memory_space<vmem>>, %arg5: memref<2x1x256xf32, #tpu.memory_space<vmem>>) attributes {dimension_semantics = [#tpu.dimension_semantics<parallel>, #tpu.dimension_semantics<parallel>], iteration_bounds = array<i64: 1, 1>, scalar_prefetch = 0 : i64, scratch_operands = 0 : i64, tpu.core_type = #tpu.core_type<tc>, window_params = [{transform_indices = @transform_0, window_bounds = array<i64: 4>}, {transform_indices = @transform_1, window_bounds = array<i64: 1>}, {transform_indices = @transform_2, window_bounds = array<i64: 2, 4, 1, 256>}, {transform_indices = @transform_3, window_bounds = array<i64: 2, 1, 256>}]} {
    %c0 = arith.constant 0 : index
    %c0_0 = arith.constant 0 : index
    %c0_1 = arith.constant 0 : index
    %c0_2 = arith.constant 0 : index
    %0 = vector.load %arg4[%c0, %c0_0, %c0_1, %c0_2] : memref<2x4x1x256xf32, #tpu.memory_space<vmem>>, vector<2x1x1x256xf32>
    %1 = vector.shape_cast %0 : vector<2x1x1x256xf32> to vector<2x1x256xf32>
    %c0_3 = arith.constant 0 : index
    %2 = memref.load %arg2[%c0_3] : memref<4xf32, #tpu.memory_space<smem>>
    %3 = vector.broadcast %2 : f32 to vector<2x1x256xf32>
    %4 = arith.mulf %1, %3 : vector<2x1x256xf32>
    %c0_4 = arith.constant 0 : index
    %c1 = arith.constant 1 : index
    %c0_5 = arith.constant 0 : index
    %c0_6 = arith.constant 0 : index
    %5 = vector.load %arg4[%c0_4, %c1, %c0_5, %c0_6] : memref<2x4x1x256xf32, #tpu.memory_space<vmem>>, vector<2x1x1x256xf32>
    %6 = vector.shape_cast %5 : vector<2x1x1x256xf32> to vector<2x1x256xf32>
    %c1_7 = arith.constant 1 : index
    %7 = memref.load %arg2[%c1_7] : memref<4xf32, #tpu.memory_space<smem>>
    %8 = vector.broadcast %7 : f32 to vector<2x1x256xf32>
    %9 = arith.mulf %6, %8 : vector<2x1x256xf32>
    %10 = arith.addf %4, %9 : vector<2x1x256xf32>
    %c0_8 = arith.constant 0 : index
    %c2 = arith.constant 2 : index
    %c0_9 = arith.constant 0 : index
    %c0_10 = arith.constant 0 : index
    %11 = vector.load %arg4[%c0_8, %c2, %c0_9, %c0_10] : memref<2x4x1x256xf32, #tpu.memory_space<vmem>>, vector<2x1x1x256xf32>
    %12 = vector.shape_cast %11 : vector<2x1x1x256xf32> to vector<2x1x256xf32>
    %c2_11 = arith.constant 2 : index
    %13 = memref.load %arg2[%c2_11] : memref<4xf32, #tpu.memory_space<smem>>
    %14 = vector.broadcast %13 : f32 to vector<2x1x256xf32>
    %15 = arith.mulf %12, %14 : vector<2x1x256xf32>
    %16 = arith.addf %10, %15 : vector<2x1x256xf32>
    %c0_12 = arith.constant 0 : index
    %c3 = arith.constant 3 : index
    %c0_13 = arith.constant 0 : index
    %c0_14 = arith.constant 0 : index
    %17 = vector.load %arg4[%c0_12, %c3, %c0_13, %c0_14] : memref<2x4x1x256xf32, #tpu.memory_space<vmem>>, vector<2x1x1x256xf32>
    %18 = vector.shape_cast %17 : vector<2x1x1x256xf32> to vector<2x1x256xf32>
    %c3_15 = arith.constant 3 : index
    %19 = memref.load %arg2[%c3_15] : memref<4xf32, #tpu.memory_space<smem>>
    %20 = vector.broadcast %19 : f32 to vector<2x1x256xf32>
    %21 = arith.mulf %18, %20 : vector<2x1x256xf32>
    %22 = arith.addf %16, %21 : vector<2x1x256xf32>
    %c0_16 = arith.constant 0 : index
    %23 = memref.load %arg3[%c0_16] : memref<1xf32, #tpu.memory_space<smem>>
    %24 = vector.broadcast %23 : f32 to vector<2x1x256xf32>
    %25 = arith.addf %22, %24 : vector<2x1x256xf32>
    %c0_17 = arith.constant 0 : index
    %c0_18 = arith.constant 0 : index
    %c0_19 = arith.constant 0 : index
    %26 = vector.load %arg5[%c0_17, %c0_18, %c0_19] : memref<2x1x256xf32, #tpu.memory_space<vmem>>, vector<2x1x256xf32>
    tpu.vector_store %arg5[%c0_17, %c0_18, %c0_19], %25 {strides = array<i32>} : memref<2x1x256xf32, #tpu.memory_space<vmem>>, vector<2x1x256xf32>,
    return
  }
  func.func @transform_0(%arg0: i32, %arg1: i32) -> i32 {
    %c0_i32 = arith.constant 0 : i32
    %c0_i32_0 = arith.constant 0 : i32
    return %c0_i32 : i32
  }
  func.func @transform_1(%arg0: i32, %arg1: i32) -> i32 {
    %c0_i32 = arith.constant 0 : i32
    %c0_i32_0 = arith.constant 0 : i32
    return %c0_i32 : i32
  }
  func.func @transform_2(%arg0: i32, %arg1: i32) -> (i32, i32, i32, i32) {
    %c0_i32 = arith.constant 0 : i32
    %c0_i32_0 = arith.constant 0 : i32
    %c0_i32_1 = arith.constant 0 : i32
    return %arg0, %c0_i32, %arg1, %c0_i32_0 : i32, i32, i32, i32
  }
  func.func @transform_3(%arg0: i32, %arg1: i32) -> (i32, i32, i32) {
    %c0_i32 = arith.constant 0 : i32
    %c0_i32_0 = arith.constant 0 : i32
    return %arg0, %arg1, %c0_i32 : i32, i32, i32
  }
}

</mosaic_0001>

<bundles_post_ra>
// kernel: tpu_custom_call.1
= control target key start
LH: loop header
LB: loop body
LE: loop exit
PB: predicated region body
PF: predicated region fallthrough
CT: control target
= control target key end

     0   :  { %9 = vsyncpa [#allocation6], 0  ;;  %s235_s0 = inlined_call_operand.vmem [shape: f32[4], index: 0, kind: input, shape index: {}]   ;;  %s236_s1 = inlined_call_operand.<no memory space> [shape: f32[1], index: 1, kind: input, shape index: {}]   ;;  %s237_s2 = inlined_call_operand.hbm [shape: f32[2,4,1,256], index: 2, kind: input, shape index: {}]   ;;  %s238_s3 = inlined_call_operand.hbm [shape: f32[2,1,256], index: 3, kind: output, shape index: {}]  }
   0x1   :  { %10 = vsyncpa [#allocation4], 0 }
   0x2   :  { %11 = vsyncpa [#allocation5], 0  ;;  %s18_s14 = sshll.u32 %s235_s0, 4  ;;  %s19_s14 = int_to_ptr.vmem [resolvable:$true] %s18_s14 }
   0x3   :  { %s112_s15 = scalar_lea.vmem %s19_s14, 16  ;;  %p117_p1 = scmp.lt.s32.totalorder %s19_s14, %s19_s14 }
   0x4   :  { %p113_p0 = scmp.ne.s32.totalorder %s19_s14, %s112_s15  ;;  %p118_p2 = scmp.lt.s32.totalorder %s112_s15, %s112_s15 }
   0x6   :  { %p119_p3 = por %p118_p2, %p117_p1 }
   0x8   :  { %p120_p4 = pnand %p119_p3, %p113_p0 }
   0xa   :  { %123 = shalt.err (!%p120_p4)
}
   0xb   :  { %s174_s16 = smov [#allocation3]   ;;  %s175_s17 = smov [#allocation7]  }
   0xc   :  { %21 = dma.vmem_to_smem %s19_s14, 16, %s174_s16, [#allocation6]  }
   0xd   :  { %s29_s18 = sshll.u32 %s175_s17, 4  ;;  %s124_s21 = scalar_lea.hbm %s237_s2, 256  ;;  %s30_s18 = int_to_ptr.vmem [resolvable:$true] %s29_s18 }
   0xe   :  { %p125_p5 = scmp.ne.s32.totalorder %s237_s2, %s124_s21  ;;  %p128_p6 = scmp.lt.u32.totalorder %s124_s21, %s237_s2 }
  0x10   :  { %p130_p7 = pnand %p128_p6, %p125_p5 }
  0x12   :  { %133 = shalt.err (!%p130_p7)
}
  0x13   :  { %s134_s25 = scalar_lea.vmem %s30_s18, 256  ;;  %p139_p9 = scmp.lt.s32.totalorder %s30_s18, %s30_s18 }
  0x14   :  { %p135_p8 = scmp.ne.s32.totalorder %s30_s18, %s134_s25  ;;  %p140_p10 = scmp.lt.s32.totalorder %s134_s25, %s134_s25 }
  0x16   :  { %p141_p11 = por %p140_p10, %p139_p9 }
  0x18   :  { %p142_p12 = pnand %p141_p11, %p135_p8 }
  0x1a   :  { %145 = shalt.err (!%p142_p12)
}
  0x1b   :  { %s176_s26 = smov 32   ;;  %s177_s27 = smov 2  }
  0x1c   :  { %35 = dma.hbm_to_vmem [thread:$0]  %s237_s2, 256, %s30_s18, [#allocation4], %s176_s26, %s176_s26, %s177_s27  }
  0x1d   :  { %168 = dma.done.wait [#allocation6], 16  }
  0x1e   :  { %169 = vsyncadd [#allocation6], 4294967280 }
  0x1f   :  { %170 = dma.done.wait [#allocation4], 256  }
  0x20   :  { %171 = vsyncadd [#allocation4], 4294967040 }
  0x21   :  { %42 = sfence }
  0x22   :  { %s45_s30 = sld [smem:[#allocation3]]  ;;  %s104_s4 = sld [smem:[#allocation3 + $0x1]]  ;;  %v43_v0 = vld [vmem:[#allocation7] sm:$0x3]  ;;  %v44_v1 = vld [vmem:[#allocation7 + $0x8] sm:$0x3]  ;;  %v80_v22 = vlaneseq  ;;  %v77_v25 = vstv %s236_s1 }
  0x23   :  { %s105_s5 = sld [smem:[#allocation3 + $0x2]]  ;;  %s106_s6 = sld [smem:[#allocation3 + $0x3]]  ;;  %v50_v2 = vld [vmem:[#allocation7 + $0x2] sm:$0x3]  ;;  %v59_v3 = vld [vmem:[#allocation7 + $0x4] sm:$0x3] }
  0x24   :  { %v51_v4 = vld [vmem:[#allocation7 + $0xa] sm:$0x3]  ;;  %v60_v6 = vld [vmem:[#allocation7 + $0xc] sm:$0x3]  ;;  %v68_v10 = vld [vmem:[#allocation7 + $0x6] sm:$0x3] }
  0x25   :  { %v69_v12 = vld [vmem:[#allocation7 + $0xe] sm:$0x3]  ;;  %s178_s8 = smov [#allocation8]   ;;  %vm82_vm0 = vcmp.lt.s32.totalorder %v80_v22, 256 }
  0x26   :  { %s91_s9 = sshll.u32 %s178_s8, 4  ;;  %s92_s9 = int_to_ptr.vmem [resolvable:$true] %s91_s9 }
  0x27   :  { %s146_s10 = scalar_lea.vmem %s92_s9, 64  ;;  %p151_p0 = scmp.lt.s32.totalorder %s92_s9, %s92_s9 }
  0x28   :  { %v46_v5 = vstv %s45_s30  ;;  %v53_v8 = vstv %s104_s4  ;;  %p147_p13 = scmp.ne.s32.totalorder %s92_s9, %s146_s10  ;;  %p152_p1 = scmp.lt.s32.totalorder %s146_s10, %s146_s10 }
  0x29   :  { %v47_v7 = vmul.f32 %v46_v5, %v43_v0  ;;  %v62_v9 = vstv %s105_s5  ;;  %v48_v11 = vmul.f32 %v46_v5, %v44_v1  ;;  %v54_v13 = vmul.f32 %v53_v8, %v50_v2 }
  0x2a   :  { %v63_v14 = vmul.f32 %v62_v9, %v59_v3  ;;  %v71_v15 = vstv %s106_s6  ;;  %v55_v16 = vmul.f32 %v53_v8, %v51_v4  ;;  %v64_v17 = vmul.f32 %v62_v9, %v60_v6  ;;  %p153_p2 = por %p152_p1, %p151_p0 }
  0x2b   :  { %v56_v18 = vadd.f32 %v54_v13, %v47_v7  ;;  %v72_v19 = vmul.f32 %v71_v15, %v68_v10  ;;  %v73_v21 = vmul.f32 %v71_v15, %v69_v12 }
  0x2c   :  { %v57_v20 = vadd.f32 %v55_v16, %v48_v11  ;;  %p154_p3 = pnand %p153_p2, %p147_p13 }
  0x2d   :  { %v65_v23 = vadd.f32 %v63_v14, %v56_v18 }
  0x2e   :  { %v66_v24 = vadd.f32 %v64_v17, %v57_v20 }
  0x2f   :  { %v74_v26 = vadd.f32 %v72_v19, %v65_v23 }
  0x30   :  { %v75_v27 = vadd.f32 %v73_v21, %v66_v24 }
  0x31   :  { %v78_v28 = vadd.f32 %v77_v25, %v74_v26 }
  0x32   :  { %v79_v29 = vadd.f32 %v77_v25, %v75_v27 }
  0x33   :  { %84 = vst.msk [vmem:[#allocation8] sm:$0x3] %vm82_vm0, %v78_v28 }
  0x34   :  { %85 = vst.msk [vmem:[#allocation8 + $0x2] sm:$0x3] %vm82_vm0, %v79_v29 }
  0x35   :  { %157 = shalt.err (!%p154_p3)
}
  0x36   :  { %s158_s1 = scalar_lea.hbm %s238_s3, 64 }
  0x37   :  { %p159_p4 = scmp.ne.s32.totalorder %s238_s3, %s158_s1  ;;  %p162_p5 = scmp.lt.u32.totalorder %s158_s1, %s238_s3 }
  0x39   :  { %p164_p6 = pnand %p162_p5, %p159_p4 }
  0x3b   :  { %167 = shalt.err (!%p164_p6)
}
  0x3c   :  { %97 = dma.vmem_to_hbm [thread:$0]  %s92_s9, 64, %s238_s3, [#allocation5], %s176_s26, %s176_s26, %s177_s27  }
  0x3d   :  { %172 = dma.done.wait [#allocation5], 64  }
  0x3e   :  { %173 = vsyncadd [#allocation5], 4294967232 }
  0x3f   :  { %101 = vsyncpa [#allocation4], 1 }
  0x40   :  { %102 = vsyncpa [#allocation5], 1 }
  0x41   :  { %103 = vsyncpa [#allocation6], 1 }

</bundles_post_ra>
